<compile_context>
chip_gen: v5e
topology: v5e:2x2
jax: 0.10.0
libtpu: 0.0.40
codegen_flags: <defaults>
</compile_context>

<pallas_src>
import functools

import jax
import jax.numpy as jnp
from jax.experimental import pallas as pl
from jax.experimental.pallas import tpu as pltpu

EPS = 1e-5
LANES = 128


# --------------------------------------------------------------------------- #
# BN1 batch statistics: per-sample partial sum / sum-sq, reduced in the wrapper#
# ("parallel" over N so both v7x TensorCores split the batch).                 #
# --------------------------------------------------------------------------- #
def bn_stats_kernel(x_ref, stat_ref):
    cp = x_ref.shape[-1]
    x = x_ref[...].reshape(-1, cp).astype(jnp.float32)          # (H*W, CP), upcast from bf16
    stat_ref[0:1, :] = jnp.sum(x, axis=0, keepdims=True)
    stat_ref[1:2, :] = jnp.sum(x * x, axis=0, keepdims=True)


def bn_batch_stats(x):
    n, h, w, cp = x.shape
    partials = pl.pallas_call(
        bn_stats_kernel,
        out_shape=jax.ShapeDtypeStruct((n, 2, cp), jnp.float32),
        grid=(n,),
        in_specs=[pl.BlockSpec((None, h, w, cp), lambda i: (i, 0, 0, 0))],
        out_specs=pl.BlockSpec((None, 2, cp), lambda i: (i, 0, 0)),
        compiler_params=pltpu.CompilerParams(
            dimension_semantics=("parallel",)),
    )(x)
    return jnp.sum(partials, axis=0)                            # (2, cp) tiny reduction in XLA


# --------------------------------------------------------------------------- #
# Folded BN affine + ReLU + 3x3 conv (+ fused next-BN stats / + residual add). #
# --------------------------------------------------------------------------- #
def bn_relu_conv_kernel(x_ref, scale_ref, shift_ref, w_ref, *rest,
                        emit_stats, add_residual):
    idx = 0
    res_ref = None
    if add_residual:
        res_ref = rest[idx]; idx += 1
    out_ref = rest[idx]; idx += 1
    stats_ref = None
    if emit_stats:
        stats_ref = rest[idx]; idx += 1
    patches_ref = rest[idx]

    H, W, CP = x_ref.shape
    HW = H * W
    KC = 3 * CP

    # Folded BN (per-channel scale/shift from batch stats) + ReLU, upcast to f32.
    xf = x_ref[...].reshape(HW, CP).astype(jnp.float32)
    hf = jnp.maximum(xf * scale_ref[...] + shift_ref[...], 0.0)

    # W-boundary masks from one iota (mod W) -- no broadcast_to + reshape per step.
    col = jax.lax.broadcasted_iota(jnp.int32, (HW, CP), 0) % W
    # dx-shifted taps via XLU roll + mask (no padded activation copy materialized).
    left = jnp.where(col >= 1, pltpu.roll(hf, shift=1, axis=0), 0.0)        # h[y, x-1]
    right = jnp.where(col <= W - 2, pltpu.roll(hf, shift=HW - 1, axis=0), 0.0)  # h[y, x+1]

    # im2col, 3x-wide: scratch rows [0:W) and [W+HW:HW+2W) are the dy zero-padding rows.
    # They are re-zeroed every step: with a "parallel" grid the second TensorCore never
    # executes program_id == 0, so a once-only init would leave garbage on that core.
    zero_slab = jnp.zeros((W, KC), jnp.bfloat16)
    patches_ref[0:W, :] = zero_slab
    patches_ref[W + HW:HW + 2 * W, :] = zero_slab
    patches_ref[W:W + HW, 0:CP] = left.astype(jnp.bfloat16)
    patches_ref[W:W + HW, CP:2 * CP] = hf.astype(jnp.bfloat16)
    patches_ref[W:W + HW, 2 * CP:3 * CP] = right.astype(jnp.bfloat16)

    # Three accumulating MXU matmuls (one per kernel row ky): (HW, 3CP) x (3CP, CP),
    # bf16 in / f32 accumulation.  Row offset ky*W selects the dy-shifted slab.
    conv = jnp.dot(patches_ref[0:HW, :], w_ref[0:KC, :],
                   preferred_element_type=jnp.float32)
    conv += jnp.dot(patches_ref[W:W + HW, :], w_ref[KC:2 * KC, :],
                    preferred_element_type=jnp.float32)
    conv += jnp.dot(patches_ref[2 * W:2 * W + HW, :], w_ref[2 * KC:3 * KC, :],
                    preferred_element_type=jnp.float32)

    if emit_stats:
        # Fused BN2 batch-stat partials from the f32 conv result (avoids an HBM re-read of y).
        stats_ref[0:1, :] = jnp.sum(conv, axis=0, keepdims=True)
        stats_ref[1:2, :] = jnp.sum(conv * conv, axis=0, keepdims=True)

    if add_residual:
        conv = conv + res_ref[...].reshape(HW, CP).astype(jnp.float32)   # identity skip

    out_ref[...] = conv.reshape(H, W, CP).astype(out_ref.dtype)


def bn_relu_conv(x, scale, shift, w_mat, residual=None, emit_stats=False,
                 out_dtype=jnp.float32):
    n, h, w, cp = x.shape
    kc9 = w_mat.shape[0]                                   # 9 * cp
    hw = h * w

    act_spec = pl.BlockSpec((None, h, w, cp), lambda i: (i, 0, 0, 0))
    vec_spec = pl.BlockSpec((1, cp), lambda i: (0, 0))
    w_spec = pl.BlockSpec((kc9, cp), lambda i: (0, 0))
    stats_spec = pl.BlockSpec((None, 2, cp), lambda i: (i, 0, 0))

    operands = [x, scale, shift, w_mat]
    in_specs = [act_spec, vec_spec, vec_spec, w_spec]
    if residual is not None:
        operands.append(residual)
        in_specs.append(act_spec)

    y_shape = jax.ShapeDtypeStruct((n, h, w, cp), out_dtype)
    if emit_stats:
        out_shape = (y_shape, jax.ShapeDtypeStruct((n, 2, cp), jnp.float32))
        out_specs = (act_spec, stats_spec)
    else:
        out_shape = y_shape
        out_specs = act_spec

    # VMEM budget: double-buffered tiles + im2col scratch + headroom, capped at 48 MiB
    # (safely below v7x's 64 MiB physical VMEM per TensorCore; fine on v5e/v6e too).
    def _bytes(shape, dtype):
        sz = 1
        for d in shape:
            sz *= d
        return sz * jnp.dtype(dtype).itemsize

    tile_bytes = (_bytes((hw, cp), x.dtype)                        # activation tile
                  + 2 * _bytes((1, cp), jnp.float32)               # scale / shift
                  + _bytes((kc9, cp), jnp.bfloat16)                # im2col weight matrix
                  + _bytes((hw, cp), out_dtype)                    # output tile
                  + (_bytes((hw, cp), x.dtype) if residual is not None else 0)
                  + (_bytes((2, cp), jnp.float32) if emit_stats else 0))
    scratch_bytes = _bytes((hw + 2 * w, 3 * cp), jnp.bfloat16)
    vmem_limit = int(min(max(2 * tile_bytes + scratch_bytes + (4 << 20), 16 << 20),
                         48 << 20))

    kernel = functools.partial(bn_relu_conv_kernel,
                               emit_stats=emit_stats,
                               add_residual=residual is not None)
    return pl.pallas_call(
        kernel,
        out_shape=out_shape,
        grid=(n,),
        in_specs=in_specs,
        out_specs=out_specs,
        scratch_shapes=[pltpu.VMEM((hw + 2 * w, 3 * cp), jnp.bfloat16)],   # 3x-wide im2col
        compiler_params=pltpu.CompilerParams(
            dimension_semantics=("parallel",),      # batch axis -> both v7x TensorCores
            vmem_limit_bytes=vmem_limit),
    )(*operands)


# --------------------------------------------------------------------------- #
# Wrapper: PyTorch NCHW/OIHW <-> lane-dense padded NHWC; stats -> folded affine#
# --------------------------------------------------------------------------- #
def basic_block(x_nchw, w1_oihw, w2_oihw, g1, b1, g2, b2):
    n, c, h, w = x_nchw.shape
    # TODO(synk): W % 8 != 0 (e.g. 14x14 / 7x7 stages) needs masked dy-slab handling.
    assert w % 8 == 0, "W must be a multiple of 8 (sublane-aligned dy slabs)"
    cp = ((c + LANES - 1) // LANES) * LANES               # lane-dense channel padding

    # NCHW -> padded NHWC, stored in bf16 (halves HBM traffic for the activation reads).
    # In a full model this layout conversion would be hoisted to the model boundary.
    x = jnp.transpose(x_nchw, (0, 2, 3, 1)).astype(jnp.float32)
    x = jnp.pad(x, ((0, 0), (0, 0), (0, 0), (0, cp - c))).astype(jnp.bfloat16)

    def prep_weight(w_oihw):
        hwio = jnp.transpose(w_oihw, (2, 3, 1, 0)).astype(jnp.float32)   # (3,3,Cin,Cout)
        hwio = jnp.pad(hwio, ((0, 0), (0, 0), (0, cp - c), (0, cp - c)))
        return hwio.reshape(9 * cp, cp).astype(jnp.bfloat16)             # rows = (ky,kx,cin)

    def prep_param(p):
        return jnp.pad(p.astype(jnp.float32), (0, cp - c))

    w1m, w2m = prep_weight(w1_oihw), prep_weight(w2_oihw)
    g1p, b1p, g2p, b2p = map(prep_param, (g1, b1, g2, b2))
    count = n * h * w

    def folded_affine(stats, gamma, beta):
        mean = stats[0] / count
        var = jnp.maximum(stats[1] / count - mean * mean, 0.0)           # one-pass variance
        scale = gamma * jax.lax.rsqrt(var + EPS)
        shift = beta - mean * scale
        return scale.reshape(1, cp), shift.reshape(1, cp)

    s1, t1 = folded_affine(bn_batch_stats(x), g1p, b1p)
    # conv1(relu(bn1(x))), bf16 output, plus fused per-sample BN2 stat partials.
    y, stats2 = bn_relu_conv(x, s1, t1, w1m, emit_stats=True, out_dtype=jnp.bfloat16)
    s2, t2 = folded_affine(jnp.sum(stats2, axis=0), g2p, b2p)
    out = bn_relu_conv(y, s2, t2, w2m, residual=x, out_dtype=jnp.float32)  # x + conv2(relu(bn2(y)))

    return jnp.transpose(out[..., :c], (0, 3, 1, 2))      # strip channel pad, back to NCHW


def reference(x, w1, w2, g1, b1, g2, b2):
    """Pure-JAX reference of the PyTorch forward (training-mode BN)."""
    def bn(z, g, b):
        m = jnp.mean(z, axis=(0, 2, 3), keepdims=True)
        v = jnp.mean((z - m) ** 2, axis=(0, 2, 3), keepdims=True)
        return (z - m) * jax.lax.rsqrt(v + EPS) * g.reshape(1, -1, 1, 1) + b.reshape(1, -1, 1, 1)

    r = jnp.maximum(bn(x, g1, b1), 0.0)
    r = jax.lax.conv_general_dilated(r, w1, (1, 1), ((1, 1), (1, 1)),
                                     dimension_numbers=("NCHW", "OIHW", "NCHW"))
    r = jnp.maximum(bn(r, g2, b2), 0.0)
    r = jax.lax.conv_general_dilated(r, w2, (1, 1), ((1, 1), (1, 1)),
                                     dimension_numbers=("NCHW", "OIHW", "NCHW"))
    return x + r


if __name__ == "__main__":
    key = jax.random.PRNGKey(0)
    ks = jax.random.split(key, 7)

    # inplanes == planes (required for identity skip with downsample=None)
    N, C, H, W = 2, 4, 16, 16
    x = jax.random.normal(ks[0], (N, C, H, W), jnp.float32)

    w1 = 0.1 * jax.random.normal(ks[1], (C, C, 3, 3), jnp.float32)   # conv1, OIHW, no bias
    w2 = 0.1 * jax.random.normal(ks[2], (C, C, 3, 3), jnp.float32)   # conv2, OIHW, no bias
    g1 = 1.0 + 0.1 * jax.random.normal(ks[3], (C,), jnp.float32)
    b1 = 0.1 * jax.random.normal(ks[4], (C,), jnp.float32)
    g2 = 1.0 + 0.1 * jax.random.normal(ks[5], (C,), jnp.float32)
    b2 = 0.1 * jax.random.normal(ks[6], (C,), jnp.float32)

    out = basic_block(x, w1, w2, g1, b1, g2, b2)
    jax.block_until_ready(out)

    ref = reference(x, w1, w2, g1, b1, g2, b2)
    err = float(jnp.max(jnp.abs(out - ref)))
    # bf16 activation storage (x, y) + bf16 MXU operands vs f32 reference -> 3e-2 tolerance.
    assert out.shape == (N, C, H, W) and err < 3e-2, f"max abs err = {err}"
    print("KERNEL_OK")
</pallas_src>

<mosaic_0001>
module attributes {stable_mosaic.version = 11 : i64} {
  func.func @bn_stats_kernel(%arg0: i32, %arg1: memref<1x16x16x128xbf16, #tpu.memory_space<vmem>>, %arg2: memref<1x2x128xf32, #tpu.memory_space<vmem>>) attributes {dimension_semantics = [#tpu.dimension_semantics<parallel>], iteration_bounds = array<i64: 2>, scalar_prefetch = 0 : i64, scratch_operands = 0 : i64, tpu.core_type = #tpu.core_type<tc>, window_params = [{transform_indices = @transform_0, window_bounds = array<i64: 1, 16, 16, 128>}, {transform_indices = @transform_1, window_bounds = array<i64: 1, 2, 128>}]} {
    %c0 = arith.constant 0 : index
    %c0_0 = arith.constant 0 : index
    %c0_1 = arith.constant 0 : index
    %c0_2 = arith.constant 0 : index
    %0 = vector.load %arg1[%c0, %c0_0, %c0_1, %c0_2] : memref<1x16x16x128xbf16, #tpu.memory_space<vmem>>, vector<1x16x16x128xbf16>
    %1 = vector.shape_cast %0 : vector<1x16x16x128xbf16> to vector<16x16x128xbf16>
    %2 = vector.shape_cast %1 : vector<16x16x128xbf16> to vector<256x128xbf16>
    %3 = arith.extf %2 : vector<256x128xbf16> to vector<256x128xf32>
    %cst = arith.constant dense<0.000000e+00> : vector<128xf32>
    %4 = vector.multi_reduction <add>, %3, %cst [0] : vector<256x128xf32> to vector<128xf32>
    %5 = vector.shape_cast %4 : vector<128xf32> to vector<1x128xf32>
    %c0_3 = arith.constant 0 : index
    %c0_4 = arith.constant 0 : index
    %c0_5 = arith.constant 0 : index
    %6 = vector.load %arg2[%c0_3, %c0_4, %c0_5] : memref<1x2x128xf32, #tpu.memory_space<vmem>>, vector<1x1x128xf32>
    %7 = vector.shape_cast %6 : vector<1x1x128xf32> to vector<1x128xf32>
    %8 = vector.shape_cast %5 : vector<1x128xf32> to vector<1x1x128xf32>
    tpu.vector_store %arg2[%c0_3, %c0_4, %c0_5], %8 {strides = array<i32>} : memref<1x2x128xf32, #tpu.memory_space<vmem>>, vector<1x1x128xf32>,
    %9 = arith.mulf %3, %3 : vector<256x128xf32>
    %cst_6 = arith.constant dense<0.000000e+00> : vector<128xf32>
    %10 = vector.multi_reduction <add>, %9, %cst_6 [0] : vector<256x128xf32> to vector<128xf32>
    %11 = vector.shape_cast %10 : vector<128xf32> to vector<1x128xf32>
    %c0_7 = arith.constant 0 : index
    %c1 = arith.constant 1 : index
    %c0_8 = arith.constant 0 : index
    %12 = vector.load %arg2[%c0_7, %c1, %c0_8] : memref<1x2x128xf32, #tpu.memory_space<vmem>>, vector<1x1x128xf32>
    %13 = vector.shape_cast %12 : vector<1x1x128xf32> to vector<1x128xf32>
    %14 = vector.shape_cast %11 : vector<1x128xf32> to vector<1x1x128xf32>
    tpu.vector_store %arg2[%c0_7, %c1, %c0_8], %14 {strides = array<i32>} : memref<1x2x128xf32, #tpu.memory_space<vmem>>, vector<1x1x128xf32>,
    return
  }
  func.func @transform_0(%arg0: i32) -> (i32, i32, i32, i32) {
    %c0_i32 = arith.constant 0 : i32
    %c0_i32_0 = arith.constant 0 : i32
    %c0_i32_1 = arith.constant 0 : i32
    %c0_i32_2 = arith.constant 0 : i32
    return %arg0, %c0_i32, %c0_i32_0, %c0_i32_1 : i32, i32, i32, i32
  }
  func.func @transform_1(%arg0: i32) -> (i32, i32, i32) {
    %c0_i32 = arith.constant 0 : i32
    %c0_i32_0 = arith.constant 0 : i32
    %c0_i32_1 = arith.constant 0 : i32
    return %arg0, %c0_i32, %c0_i32_0 : i32, i32, i32
  }
}

</mosaic_0001>

<bundles_post_ra>
// kernel: tpu_custom_call.1
= control target key start
LH: loop header
LB: loop body
LE: loop exit
PB: predicated region body
PF: predicated region fallthrough
CT: control target
= control target key end

     0   :  { %6 = vsyncpa [#allocation3], 0  ;;  %s792_s0 = inlined_call_operand.hbm [shape: bf16[2,16,16,128], index: 0, kind: input, shape index: {}]   ;;  %s793_s1 = inlined_call_operand.hbm [shape: f32[2,2,128], index: 1, kind: output, shape index: {}]  }
   0x1   :  { %8 = vsyncpa [#allocation3 + $0x1], 0 }
   0x2   :  { %9 = vsyncpa [#allocation4], 0 }
   0x3   :  { %11 = vsyncpa [#allocation4 + $0x1], 0  ;;  %s646_s6 = smov 0   ;;  %s648_s7 = smov 0  }
   0x4   :  { %s650_s8 = smov 0   ;;  %s652_s9 = smov 0  }
   0x5 LB: > { %s667_s10 = sadd.s32 4294967295, %s632_s9   ;;  %s395_s11 = sadd.s32 4294967294, %s632_s9   ;;  %s632_s9 = sphi %s652_s9, %s803_s9   ;;  %s628_s8 = sphi %s650_s8, %s802_s8   ;;  %s624_s7 = sphi %s648_s7, %s801_s7   ;;  %s620_s6 = sphi %s646_s6, %s800_s6  }
   0x6   : > { %s671_s12 = sadd.s32 1, %s632_s9   ;;  %s24_s13 = sadd.s32 1, %s628_s8 }
   0x7   : > { %s21_s14 = ssub.s32 %s632_s9, %s671_s12  ;;  %p31_p0 = scmp.ne.s32.totalorder %s628_s8, %s624_s7 }
   0x8   : > { %p22_p1 = scmp.eq.s32.totalorder %s21_s14, 0  ;;  %p32_p2 = scmp.eq.s32.totalorder %s632_s9, 0 }
   0x9   : > { %p37_p3 = scmp.ne.s32.totalorder %s624_s7, %s620_s6  ;;  %p38_p4 = scmp.eq.s32.totalorder %s667_s10, 0 }
   0xa   : > { %s683_s15 = scalar_select %p22_p1, %s628_s8, %s24_s13  }
   0xb   : > { %p685_p5 = por %p32_p2, %p31_p0  ;;  %p689_p6 = por %p38_p4, %p37_p3 }
   0xc   : > { %p61_p7 = scmp.eq.s32.totalorder %s667_s10, 1  ;;  %p67_p8 = scmp.eq.s32.totalorder %s395_s11, 1 }
   0xd   : > { %p500_p10 = scmp.lt.s32.totalorder %s632_s9, 2  ;;  %s87_s20 = sand.u32 1, %s628_s8  }
   0xe   : > { %p696_p11 = por %p61_p7, %p31_p0  ;;  %p700_p12 = por %p67_p8, %p37_p3 }
   0xf   : > { %s408_s21 = sshll.u32 %s632_s9, 7  ;;  %s398_s22 = sshll.u32 %s87_s20, 7 }
  0x10   : > { %s96_s25 = scalar_lea.hbm %s792_s0, %s408_s21  ;;  %s91_s27 = scalar_lea.vmem [#allocation2], %s398_s22 }
  0x11   : > { %s97_s26 = sshll.u32 %s96_s25, 4  ;;  %s99_s28 = sshll.u32 %s91_s27, 4  ;;  %s98_s26 = int_to_ptr.hbm [resolvable:$true] %s97_s26  ;;  %s100_s28 = int_to_ptr.vmem [resolvable:$true] %s99_s28 }
  0x12   : > { %p711_p13 = pnand %p500_p10, %p685_p5  ;;  %p401_p0 = scmp.ge.s32.totalorder %s632_s9, 1 }
  0x13   : > { %p107_p1 = scmp.lt.s32.totalorder %s632_s9, 3  ;;  %s88_s30 = scalar_lea.sflag [#allocation3], %s87_s20 }
  0x14   : > { %s536_s2 = sshra.s32 %s98_s26, 4  ;;  %p540_p3 = pneg %p711_p13  ;;  %s537_s2 = int_to_ptr.hbm [resolvable:$true] %s536_s2 }
  0x15   : > { %s538_s3 = scalar_lea.hbm %s537_s2, 128  ;;  %s543_s11 = scalar_lea.hbm %s792_s0, 256 }
  0x16   : > { %p539_p2 = scmp.ne.s32.totalorder %s537_s2, %s538_s3  ;;  %p544_p5 = scmp.lt.s32.totalorder %s537_s2, %s792_s0 }
  0x17   : > { %p545_p8 = scmp.lt.s32.totalorder %s543_s11, %s538_s3 }
  0x18   : > { %p541_p4 = pnand %p540_p3, %p539_p2 }
  0x19   : > { %p546_p10 = por %p545_p8, %p544_p5 }
  0x1a   : > { %p542_p7 = pneg %p541_p4 }
  0x1c   : > { %p547_p9 = pnand %p546_p10, %p542_p7 }
  0x1e   : > { %550 = shalt.err (!%p547_p9)
}
  0x1f   : > { %s634_s16 = smov 64   ;;  %s635_s20 = smov 4  }
  0x20   : > { %495 = dma.hbm_to_vmem [thread:$0]  (!%p711_p13), %s98_s26, 2048, %s100_s28, %s88_s30, %s634_s16, %s634_s16, %s635_s20  }
  0x21   : > { %p108_p2 = pnand %p401_p0, %p107_p1 }
  0x22   : > { %s732_s21 = sand.u32 (!%p108_p2), 1, %s624_s7  }
  0x23   : > { %111 = sbr.rel (%p108_p2) target bundleno = 123 (0x7b), region = 24  ;;  %s402_s22 = sshll.u32 (!%p108_p2), %s732_s21, 7 }
  0x24   : > { %s114_s23 = scalar_lea.sflag (!%p108_p2), [#allocation3], %s732_s21  ;;  %s736_s24 = scalar_lea.vmem (!%p108_p2), [#allocation2], %s402_s22 }
  0x28   : > { %611 = dma.done.wait (%p689_p6), %s114_s23, 2048  }
  0x29   : > { %613 = vsyncadd (%p689_p6), %s114_s23, 4294965248  ;;  %v410_v0 = vld [vmem:[%s736_s24] sm:$0xff]   ;;  %v473_v1 = vld [vmem:[%s736_s24 + $0x8] sm:$0xff]   ;;  %s403_s17 = sshll.u32 %s732_s21, 1  ;;  %s405_s25 = sshll.u32 %s667_s10, 1 }
  0x2a   : > { %v411_v2 = vunpack.c.l.bf16 %v410_v0  ;;  %v412_v3 = vunpack.c.h.bf16 %v410_v0  ;;  %v415_v4 = vunpack.c.l.bf16 %v473_v1  ;;  %v474_v5 = vld [vmem:[%s736_s24 + $0x10] sm:$0xff]   ;;  %v416_v7 = vunpack.c.h.bf16 %v473_v1  ;;  %v475_v13 = vld [vmem:[%s736_s24 + $0x18] sm:$0xff]   ;;  %v476_v22 = vld [vmem:[%s736_s24 + $0x20] sm:$0xff]   ;;  %s320_s28 = scalar_lea.hbm %s793_s1, %s405_s25  ;;  %s136_s29 = scalar_lea.vmem [#allocation5], %s403_s17 }
  0x2b   : > { %v419_v11 = vunpack.c.l.bf16 %v474_v5  ;;  %v420_v15 = vunpack.c.h.bf16 %v474_v5  ;;  %v423_v19 = vunpack.c.l.bf16 %v475_v13  ;;  %v424_v24 = vunpack.c.h.bf16 %v475_v13  ;;  %v477_v31 = vld [vmem:[%s736_s24 + $0x28] sm:$0xff]   ;;  %v478_v40 = vld [vmem:[%s736_s24 + $0x30] sm:$0xff]   ;;  %v479_v49 = vld [vmem:[%s736_s24 + $0x38] sm:$0xff]   ;;  %s322_s30 = sshll.u32 %s136_s29, 4  ;;  %s324_s2 = sshll.u32 %s320_s28, 4  ;;  %s323_s30 = int_to_ptr.vmem [resolvable:$true] %s322_s30  ;;  %s325_s2 = int_to_ptr.hbm [resolvable:$true] %s324_s2 }
  0x2c   : > { %v201_v6 = vadd.f32 %v412_v3, %v411_v2  ;;  %v239_v8 = vmul.f32 %v411_v2, %v411_v2  ;;  %v240_v9 = vmul.f32 %v412_v3, %v412_v3  ;;  %v241_v12 = vmul.f32 %v415_v4, %v415_v4  ;;  %v480_v58 = vld [vmem:[%s736_s24 + $0x40] sm:$0xff]   ;;  %v481_v3 = vld [vmem:[%s736_s24 + $0x48] sm:$0xff]   ;;  %s310_s10 = scalar_lea.sflag [#allocation4], %s732_s21  ;;  %s580_s3 = sshra.s32 %s325_s2, 4  ;;  %s581_s3 = int_to_ptr.hbm [resolvable:$true] %s580_s3 }
  0x2d   : > { %v242_v16 = vmul.f32 %v416_v7, %v416_v7  ;;  %v243_v20 = vmul.f32 %v419_v11, %v419_v11  ;;  %v244_v25 = vmul.f32 %v420_v15, %v420_v15  ;;  %v427_v28 = vunpack.c.l.bf16 %v476_v22  ;;  %s582_s4 = scalar_lea.hbm %s581_s3, 2  ;;  %s586_s13 = scalar_lea.hbm %s793_s1, 4 }
  0x2e   : > { %v202_v10 = vadd.f32 %v415_v4, %v201_v6  ;;  %v271_v17 = vadd.f32 %v240_v9, %v239_v8  ;;  %v245_v29 = vmul.f32 %v423_v19, %v423_v19  ;;  %v428_v33 = vunpack.c.h.bf16 %v476_v22  ;;  %p583_p6 = scmp.ne.s32.totalorder %s581_s3, %s582_s4  ;;  %p587_p0 = scmp.lt.s32.totalorder %s581_s3, %s793_s1 }
  0x2f   : > { %v246_v34 = vmul.f32 %v424_v24, %v424_v24  ;;  %v431_v37 = vunpack.c.l.bf16 %v477_v31  ;;  %v247_v38 = vmul.f32 %v427_v28, %v427_v28  ;;  %v432_v42 = vunpack.c.h.bf16 %v477_v31  ;;  %p588_p1 = scmp.lt.s32.totalorder %s586_s13, %s582_s4 }
  0x30   : > { %v203_v14 = vadd.f32 %v416_v7, %v202_v10  ;;  %v272_v21 = vadd.f32 %v271_v17, %v241_v12  ;;  %v248_v43 = vmul.f32 %v428_v33, %v428_v33  ;;  %v435_v46 = vunpack.c.l.bf16 %v478_v40  ;;  %v482_v12 = vld [vmem:[%s736_s24 + $0x50] sm:$0xff]   ;;  %p584_p9 = pnand %p583_p6, %p696_p11 }
  0x31   : > { %v249_v47 = vmul.f32 %v431_v37, %v431_v37  ;;  %v436_v51 = vunpack.c.h.bf16 %v478_v40  ;;  %v250_v52 = vmul.f32 %v432_v42, %v432_v42  ;;  %v439_v55 = vunpack.c.l.bf16 %v479_v49  ;;  %p589_p3 = por %p588_p1, %p587_p0 }
  0x32   : > { %v204_v18 = vadd.f32 %v419_v11, %v203_v14  ;;  %v273_v26 = vadd.f32 %v272_v21, %v242_v16  ;;  %v251_v56 = vmul.f32 %v435_v46, %v435_v46  ;;  %v440_v60 = vunpack.c.h.bf16 %v479_v49  ;;  %v483_v21 = vld [vmem:[%s736_s24 + $0x58] sm:$0xff]   ;;  %p585_p13 = pneg %p584_p9 }
  0x33   : > { %v252_v61 = vmul.f32 %v436_v51, %v436_v51  ;;  %v443_v0 = vunpack.c.l.bf16 %v480_v58  ;;  %v253_v1 = vmul.f32 %v439_v55, %v439_v55  ;;  %v444_v5 = vunpack.c.h.bf16 %v480_v58 }
  0x34   : > { %v205_v23 = vadd.f32 %v420_v15, %v204_v18  ;;  %v274_v30 = vadd.f32 %v273_v26, %v243_v20  ;;  %v254_v6 = vmul.f32 %v440_v60, %v440_v60  ;;  %v447_v9 = vunpack.c.l.bf16 %v481_v3  ;;  %p590_p4 = pnand %p589_p3, %p585_p13 }
  0x35   : > { %v255_v10 = vmul.f32 %v443_v0, %v443_v0  ;;  %v448_v14 = vunpack.c.h.bf16 %v481_v3  ;;  %v256_v15 = vmul.f32 %v444_v5, %v444_v5  ;;  %v451_v18 = vunpack.c.l.bf16 %v482_v12 }
  0x36   : > { %v206_v27 = vadd.f32 %v423_v19, %v205_v23  ;;  %v275_v35 = vadd.f32 %v274_v30, %v244_v25  ;;  %v257_v19 = vmul.f32 %v447_v9, %v447_v9  ;;  %v452_v23 = vunpack.c.h.bf16 %v482_v12  ;;  %v484_v30 = vld [vmem:[%s736_s24 + $0x60] sm:$0xff]  }
  0x38   : > { %v207_v32 = vadd.f32 %v424_v24, %v206_v27  ;;  %v276_v39 = vadd.f32 %v275_v35, %v245_v29  ;;  %v258_v24 = vmul.f32 %v448_v14, %v448_v14  ;;  %v455_v27 = vunpack.c.l.bf16 %v483_v21 }
  0x3a   : > { %v208_v36 = vadd.f32 %v427_v28, %v207_v32  ;;  %v277_v44 = vadd.f32 %v276_v39, %v246_v34  ;;  %v259_v28 = vmul.f32 %v451_v18, %v451_v18  ;;  %v456_v32 = vunpack.c.h.bf16 %v483_v21  ;;  %v485_v39 = vld [vmem:[%s736_s24 + $0x68] sm:$0xff]  }
  0x3c   : > { %v209_v41 = vadd.f32 %v428_v33, %v208_v36  ;;  %v278_v48 = vadd.f32 %v277_v44, %v247_v38  ;;  %v260_v33 = vmul.f32 %v452_v23, %v452_v23  ;;  %v459_v36 = vunpack.c.l.bf16 %v484_v30 }
  0x3e   : > { %v210_v45 = vadd.f32 %v431_v37, %v209_v41  ;;  %v279_v53 = vadd.f32 %v278_v48, %v248_v43  ;;  %v261_v37 = vmul.f32 %v455_v27, %v455_v27  ;;  %v460_v41 = vunpack.c.h.bf16 %v484_v30  ;;  %v486_v48 = vld [vmem:[%s736_s24 + $0x70] sm:$0xff]  }
  0x40   : > { %v211_v50 = vadd.f32 %v432_v42, %v210_v45  ;;  %v280_v57 = vadd.f32 %v279_v53, %v249_v47  ;;  %v262_v42 = vmul.f32 %v456_v32, %v456_v32  ;;  %v463_v45 = vunpack.c.l.bf16 %v485_v39 }
  0x42   : > { %v212_v54 = vadd.f32 %v435_v46, %v211_v50  ;;  %v281_v62 = vadd.f32 %v280_v57, %v250_v52  ;;  %v263_v46 = vmul.f32 %v459_v36, %v459_v36  ;;  %v464_v50 = vunpack.c.h.bf16 %v485_v39  ;;  %v487_v57 = vld [vmem:[%s736_s24 + $0x78] sm:$0xff]  }
  0x43   : > { %v472_v3 = vunpack.c.h.bf16 %v487_v57 }
  0x44   : > { %v213_v59 = vadd.f32 %v436_v51, %v212_v54  ;;  %v282_v2 = vadd.f32 %v281_v62, %v251_v56  ;;  %v264_v51 = vmul.f32 %v460_v41, %v460_v41  ;;  %v467_v54 = vunpack.c.l.bf16 %v486_v48 }
  0x46   : > { %v214_v63 = vadd.f32 %v439_v55, %v213_v59  ;;  %v283_v7 = vadd.f32 %v282_v2, %v252_v61  ;;  %v265_v55 = vmul.f32 %v463_v45, %v463_v45  ;;  %v468_v59 = vunpack.c.h.bf16 %v486_v48 }
  0x48   : > { %v215_v4 = vadd.f32 %v440_v60, %v214_v63  ;;  %v284_v11 = vadd.f32 %v283_v7, %v253_v1  ;;  %v266_v60 = vmul.f32 %v464_v50, %v464_v50  ;;  %v471_v63 = vunpack.c.l.bf16 %v487_v57 }
  0x4a   : > { %v216_v8 = vadd.f32 %v443_v0, %v215_v4  ;;  %v285_v16 = vadd.f32 %v284_v11, %v254_v6  ;;  %v267_v0 = vmul.f32 %v467_v54, %v467_v54  ;;  %v268_v4 = vmul.f32 %v468_v59, %v468_v59 }
  0x4b   : > { %v269_v7 = vmul.f32 %v471_v63, %v471_v63 }
  0x4c   : > { %v217_v13 = vadd.f32 %v444_v5, %v216_v8  ;;  %v286_v20 = vadd.f32 %v285_v16, %v255_v10  ;;  %v270_v10 = vmul.f32 %v472_v3, %v472_v3 }
  0x4e   : > { %v218_v17 = vadd.f32 %v447_v9, %v217_v13  ;;  %v287_v25 = vadd.f32 %v286_v20, %v256_v15 }
  0x50   : > { %v219_v22 = vadd.f32 %v448_v14, %v218_v17  ;;  %v288_v29 = vadd.f32 %v287_v25, %v257_v19 }
  0x52   : > { %v220_v26 = vadd.f32 %v451_v18, %v219_v22  ;;  %v289_v34 = vadd.f32 %v288_v29, %v258_v24 }
  0x54   : > { %v221_v31 = vadd.f32 %v452_v23, %v220_v26  ;;  %v290_v38 = vadd.f32 %v289_v34, %v259_v28 }
  0x56   : > { %v222_v35 = vadd.f32 %v455_v27, %v221_v31  ;;  %v291_v43 = vadd.f32 %v290_v38, %v260_v33 }
  0x58   : > { %v223_v40 = vadd.f32 %v456_v32, %v222_v35  ;;  %v292_v47 = vadd.f32 %v291_v43, %v261_v37 }
  0x5a   : > { %v224_v44 = vadd.f32 %v459_v36, %v223_v40  ;;  %v293_v52 = vadd.f32 %v292_v47, %v262_v42 }
  0x5c   : > { %v225_v49 = vadd.f32 %v460_v41, %v224_v44  ;;  %v294_v56 = vadd.f32 %v293_v52, %v263_v46 }
  0x5e   : > { %v226_v53 = vadd.f32 %v463_v45, %v225_v49  ;;  %v295_v61 = vadd.f32 %v294_v56, %v264_v51 }
  0x60   : > { %v227_v58 = vadd.f32 %v464_v50, %v226_v53  ;;  %v296_v1 = vadd.f32 %v295_v61, %v265_v55 }
  0x62   : > { %v228_v62 = vadd.f32 %v467_v54, %v227_v58  ;;  %v297_v5 = vadd.f32 %v296_v1, %v266_v60 }
  0x64   : > { %v229_v2 = vadd.f32 %v468_v59, %v228_v62  ;;  %v298_v8 = vadd.f32 %v297_v5, %v267_v0 }
  0x66   : > { %v230_v6 = vadd.f32 %v471_v63, %v229_v2  ;;  %v299_v11 = vadd.f32 %v298_v8, %v268_v4 }
  0x68   : > { %v231_v9 = vadd.f32 %v472_v3, %v230_v6  ;;  %v300_v13 = vadd.f32 %v299_v11, %v269_v7 }
  0x6a   : > { %v232_v12 = vrot.slane %v231_v9, 4  ;;  %v301_v15 = vadd.f32 %v300_v13, %v270_v10 }
  0x6c   : > { %v233_v14 = vadd.f32 %v232_v12, %v231_v9  ;;  %v302_v17 = vrot.slane %v301_v15, 4 }
  0x6e   : > { %v234_v16 = vrot.slane %v233_v14, 2  ;;  %v303_v19 = vadd.f32 %v302_v17, %v301_v15 }
  0x70   : > { %v235_v18 = vadd.f32 %v234_v16, %v233_v14  ;;  %v304_v21 = vrot.slane %v303_v19, 2 }
  0x72   : > { %v236_v20 = vrot.slane %v235_v18, 1  ;;  %v305_v23 = vadd.f32 %v304_v21, %v303_v19 }
  0x74   : > { %v237_v22 = vadd.f32 %v236_v20, %v235_v18  ;;  %v306_v24 = vrot.slane %v305_v23, 1 }
  0x76   : > { %238 = vst [vmem:[%s136_s29] sm:$0x1] %v237_v22  ;;  %v307_v25 = vadd.f32 %v306_v24, %v305_v23 }
  0x78   : > { %308 = vst [vmem:[%s136_s29 + $0x1] sm:$0x1] %v307_v25 }
  0x79   : > { %593 = shalt.err (!%p590_p4)
}
  0x7a   : > { %490 = dma.vmem_to_hbm [thread:$0]  (%p696_p11), %s323_s30, 32, %s325_s2, %s310_s10  }
  0x7b PF: > { %s336_s20 = sand.u32 1, %s620_s6   ;;  %p799_p7 = scmp.ge.s32.totalorder %s632_s9, 2 }
  0x7c   : > { %s337_s21 = scalar_lea.sflag [#allocation4], %s336_s20 }
  0x7d   : > { %p497_p5 = pnand %p799_p7, %p700_p12 }
  0x7f   : > { %p498_p8 = pneg %p497_p5 }
  0x81   : > { %615 = dma.done.wait (%p498_p8), %s337_s21, 32  }
  0x82   : > { %617 = vsyncadd (%p498_p8), %s337_s21, 4294967264  ;;  %p14_p10 = scmp.ge.s32.totalorder %s671_s12, 4   ;;  %s800_s6 = smov %s624_s7 }
  0x83   : > { %s801_s7 = smov %s628_s8  ;;  %s802_s8 = smov %s683_s15 }
  0x84   : > { %s803_s9 = smov %s671_s12  ;;  %16 = sbr.rel (!%p14_p10) target bundleno = 5 (0x5), region = 69 }
  0x89   :  { %343 = vsyncpa [#allocation3], 1 }
  0x8a   :  { %345 = vsyncpa [#allocation3 + $0x1], 1 }
  0x8b   :  { %346 = vsyncpa [#allocation4], 1 }
  0x8c   :  { %348 = vsyncpa [#allocation4 + $0x1], 1 }

</bundles_post_ra>
